<compile_context>
chip_gen: v6e
topology: v6e:2x2x1
jax: 0.10.0
libtpu: 0.0.40
codegen_flags: <defaults>
</compile_context>

<pallas_src>
import functools
import math

import jax
import jax.numpy as jnp
from jax.experimental import pallas as pl
from jax.experimental.pallas import tpu as pltpu

_LANE = 128      # lane width: hidden out-dims padded to this (lane-dense interior)
_SUBLANE = 8     # sublane width: W1 in-dim padded to this


def _pad_to(n, m):
    return ((n + m - 1) // m) * m


def _apply_act(h, name, leakyrelu_slope, valid_dim):
    """Elementwise activation inside the kernel (VPU/EUP).

    `valid_dim` is the un-padded feature width of this layer.  Only softmax
    (a cross-feature reduction) needs to mask the zero-padded lanes; every
    other activation's padded-lane garbage is multiplied by the zero-padded
    weight rows of the next layer (or never written, since the final layer is
    un-padded).  NOTE: any activation reducing over the *batch* axis would be
    incorrect under batch tiling.
    """
    if name == 'relu':
        return jnp.maximum(h, 0.0)
    elif name == 'sigmoid':
        return jax.nn.sigmoid(h)
    elif name == 'softplus':
        return jax.nn.softplus(h)
    elif name == 'linear':
        return h
    elif name == 'tanh':
        return jnp.tanh(h)
    elif name == 'leakyrelu':
        return jnp.where(h >= 0, h, leakyrelu_slope * h)
    elif name == 'softmax':
        if valid_dim < h.shape[1]:
            lane = jax.lax.broadcasted_iota(jnp.int32, h.shape, 1)
            h = jnp.where(lane < valid_dim, h, -jnp.inf)
        return jax.nn.softmax(h, axis=1)
    elif name == 'elu':
        return jnp.where(h > 0, h, jnp.expm1(h))
    else:
        raise ValueError(f'Unexpected activation: {name}')


def _mlp_kernel(*refs, n_layers, activation, out_activation,
                leakyrelu_slope, out_tanh_scale, valid_dims):
    # refs layout: x_ref, (w_ref, b_ref) * n_layers, o_ref
    x_ref = refs[0]
    o_ref = refs[-1]
    wb_refs = refs[1:-1]

    h = x_ref[...]
    for layer in range(n_layers):
        w = wb_refs[2 * layer][...]
        b = wb_refs[2 * layer + 1][...]
        # Feed matmul operands in the params' dtype (bf16 MXU path on
        # v6e/v7x when params are prepared in bf16); accumulate in f32.
        h_in = h.astype(w.dtype) if h.dtype != w.dtype else h
        h = jnp.dot(h_in, w, preferred_element_type=jnp.float32)
        h = h + b.astype(jnp.float32)
        name = activation if layer < n_layers - 1 else out_activation
        h = _apply_act(h, name, leakyrelu_slope, valid_dims[layer])
        if (layer == n_layers - 1 and out_activation == 'tanh'
                and out_tanh_scale != 1.0):
            h = out_tanh_scale * h
    o_ref[...] = h.astype(o_ref.dtype)


def prepare_mlp_params(weights, biases, *, dtype=jnp.float32):
    """One-time preprocessing, hoisted out of the forward path.

    PyTorch nn.Linear stores W as (out, in).  Transpose to (in, out).
    * First layer: in-dim padded only to the 8-sublane boundary (x stays
      narrow in HBM).
    * Hidden layers: out-dim padded to 128 lanes (lane-dense interior
      matmuls); next layer's in-dim matches.
    * Final layer: out-dim left un-padded so the HBM writeback is
      byte-minimal.
    Pass dtype=jnp.bfloat16 on v6e/v7x to halve weight bytes and use the
    native bf16 MXU path (accumulation stays f32).
    """
    n = len(weights)
    padded_w, padded_b, valid_dims = [], [], []
    prev_out_pad = None
    for idx, (w, b) in enumerate(zip(weights, biases)):
        w = jnp.asarray(w, dtype)
        b = jnp.asarray(b, dtype)
        out_d, in_d = w.shape
        in_p = _pad_to(in_d, _SUBLANE) if idx == 0 else prev_out_pad
        out_p = _pad_to(out_d, _LANE) if idx < n - 1 else out_d
        wt = jnp.zeros((in_p, out_p), dtype).at[:in_d, :out_d].set(w.T)
        bp = jnp.zeros((1, out_p), dtype).at[:, :out_d].set(b[None, :])
        padded_w.append(wt)
        padded_b.append(bp)
        valid_dims.append(out_d)
        prev_out_pad = out_p
    return {
        'weights': padded_w,
        'biases': padded_b,
        'valid_dims': tuple(valid_dims),
        'input_dim': int(weights[0].shape[1]),
        'input_dim_padded': int(padded_w[0].shape[0]),
        'output_dim': int(weights[-1].shape[0]),
    }


def mlp_forward(x, params, *, activation='relu', out_activation='tanh',
                leakyrelu_slope=0.2, out_tanh_scale=1.0, block_batch=1024):
    """x: (B, input_dim).  params: output of prepare_mlp_params."""
    weights = params['weights']
    biases = params['biases']
    valid_dims = params['valid_dims']
    in_dim = params['input_dim']
    in_pad = params['input_dim_padded']
    out_dim = params['output_dim']
    n_layers = len(weights)
    batch = x.shape[0]

    # Feature padding of x only if input_dim isn't already at W1's (8-sublane)
    # padded in-dim.  No-op for input_dim=16.
    if in_pad != in_dim:
        x = jnp.pad(x, ((0, 0), (0, in_pad - in_dim)))

    # Batch tiling: big tiles amortize the ~0.35us per-grid-step overhead.
    #  * batch <= block_batch: single tile == full batch, no padding at all.
    #  * otherwise: tb = block_batch (multiple of 8), pad only the remainder.
    # On v7x you may want to cap tb at round_to_8(batch/2) so the ("parallel",)
    # axis has >= 2 steps for its 2 TensorCores.
    if batch <= block_batch:
        tb = batch
        batch_pad = batch
    else:
        tb = _pad_to(block_batch, _SUBLANE)
        batch_pad = _pad_to(batch, tb)
        if batch_pad != batch:
            x = jnp.pad(x, ((0, batch_pad - batch), (0, 0)))
    grid = (batch_pad // tb,)

    kernel = functools.partial(
        _mlp_kernel,
        n_layers=n_layers,
        activation=activation,
        out_activation=out_activation,
        leakyrelu_slope=leakyrelu_slope,
        out_tanh_scale=out_tanh_scale,
        valid_dims=valid_dims,
    )

    # x tile walks the batch grid; weights/biases are constant-index full
    # blocks (index_map -> (0, 0)) so they stay resident in VMEM.
    args = [x]
    in_specs = [pl.BlockSpec((tb, in_pad), lambda i: (i, 0))]
    for w, b in zip(weights, biases):
        args.append(w)
        args.append(b)
        in_specs.append(pl.BlockSpec(w.shape, lambda i: (0, 0)))
        in_specs.append(pl.BlockSpec(b.shape, lambda i: (0, 0)))

    # Cost estimate over the valid (un-padded) dims.
    itemsize = jnp.dtype(x.dtype).itemsize
    dims = [in_dim] + list(valid_dims)
    flops = 2 * batch * sum(dims[i] * dims[i + 1] for i in range(n_layers))
    bytes_accessed = (
        itemsize * (batch * in_dim + batch * out_dim)
        + sum(int(w.size) * jnp.dtype(w.dtype).itemsize for w in weights)
        + sum(int(b.size) * jnp.dtype(b.dtype).itemsize for b in biases))
    transc_acts = ('tanh', 'sigmoid', 'softplus', 'softmax', 'elu')
    transcendentals = 0
    for layer in range(n_layers):
        name = activation if layer < n_layers - 1 else out_activation
        if name in transc_acts:
            transcendentals += batch * valid_dims[layer]

    out_p = pl.pallas_call(
        kernel,
        out_shape=jax.ShapeDtypeStruct((batch_pad, out_dim), x.dtype),
        grid=grid,
        in_specs=in_specs,
        out_specs=pl.BlockSpec((tb, out_dim), lambda i: (i, 0)),
        compiler_params=pltpu.CompilerParams(
            dimension_semantics=("parallel",),
        ),
        cost_estimate=pl.CostEstimate(
            flops=flops,
            transcendentals=transcendentals,
            bytes_accessed=bytes_accessed,
        ),
    )(*args)

    return out_p[:batch] if batch_pad != batch else out_p


def init_linear_params(key, in_dim, out_dim):
    """Deterministic init matching nn.Linear's default (uniform +/- 1/sqrt(in))."""
    kw, kb = jax.random.split(key)
    bound = 1.0 / math.sqrt(in_dim)
    w = jax.random.uniform(kw, (out_dim, in_dim), jnp.float32, -bound, bound)
    b = jax.random.uniform(kb, (out_dim,), jnp.float32, -bound, bound)
    return w, b


if __name__ == "__main__":
    # Module config (MLP(**args))
    input_dim = 16
    l_hidden = [32, 32]
    output_dim = 8
    activation = 'relu'
    out_activation = 'tanh'
    leakyrelu_slope = 0.2
    out_tanh_scale = 1.0

    batch = 2

    key = jax.random.PRNGKey(0)
    key, kx = jax.random.split(key)
    x = jax.random.normal(kx, (batch, input_dim), jnp.float32)

    dims = [input_dim] + l_hidden + [output_dim]
    weights, biases = [], []
    for i in range(len(dims) - 1):
        key, kl = jax.random.split(key)
        w, b = init_linear_params(kl, dims[i], dims[i + 1])
        weights.append(w)
        biases.append(b)

    # One-time param prep (transpose + layout padding) outside the hot path.
    params = prepare_mlp_params(weights, biases, dtype=jnp.float32)

    out = mlp_forward(
        x, params,
        activation=activation,
        out_activation=out_activation,
        leakyrelu_slope=leakyrelu_slope,
        out_tanh_scale=out_tanh_scale,
    )
    out = jax.block_until_ready(out)

    # Pure-JAX reference of the same math (original un-padded params).
    h = x
    for i, (w, b) in enumerate(zip(weights, biases)):
        h = h @ w.T + b
        if i < len(weights) - 1:
            h = jnp.maximum(h, 0.0)
        else:
            h = out_tanh_scale * jnp.tanh(h)
    assert out.shape == (batch, output_dim)
    assert jnp.allclose(out, h, atol=1e-5), "mismatch vs reference"

    print("KERNEL_OK")
</pallas_src>

<mosaic_0001>
module attributes {stable_mosaic.version = 11 : i64} {
  func.func @_mlp_kernel(%arg0: i32, %arg1: memref<2x16xf32, #tpu.memory_space<vmem>>, %arg2: memref<16x128xf32, #tpu.memory_space<vmem>>, %arg3: memref<1x128xf32, #tpu.memory_space<vmem>>, %arg4: memref<128x128xf32, #tpu.memory_space<vmem>>, %arg5: memref<1x128xf32, #tpu.memory_space<vmem>>, %arg6: memref<128x8xf32, #tpu.memory_space<vmem>>, %arg7: memref<1x8xf32, #tpu.memory_space<vmem>>, %arg8: memref<2x8xf32, #tpu.memory_space<vmem>>) attributes {dimension_semantics = [#tpu.dimension_semantics<parallel>], iteration_bounds = array<i64: 1>, scalar_prefetch = 0 : i64, scratch_operands = 0 : i64, tpu.core_type = #tpu.core_type<tc>, window_params = [{transform_indices = @transform_0, window_bounds = array<i64: 2, 16>}, {pipeline_mode = #tpu.pipeline_mode<synchronous>, transform_indices = @transform_1, window_bounds = array<i64: 16, 128>}, {pipeline_mode = #tpu.pipeline_mode<synchronous>, transform_indices = @transform_2, window_bounds = array<i64: 1, 128>}, {pipeline_mode = #tpu.pipeline_mode<synchronous>, transform_indices = @transform_3, window_bounds = array<i64: 128, 128>}, {pipeline_mode = #tpu.pipeline_mode<synchronous>, transform_indices = @transform_4, window_bounds = array<i64: 1, 128>}, {pipeline_mode = #tpu.pipeline_mode<synchronous>, transform_indices = @transform_5, window_bounds = array<i64: 128, 8>}, {pipeline_mode = #tpu.pipeline_mode<synchronous>, transform_indices = @transform_6, window_bounds = array<i64: 1, 8>}, {transform_indices = @transform_7, window_bounds = array<i64: 2, 8>}]} {
    %c0 = arith.constant 0 : index
    %c0_0 = arith.constant 0 : index
    %0 = vector.load %arg1[%c0, %c0_0] : memref<2x16xf32, #tpu.memory_space<vmem>>, vector<2x16xf32>
    %c0_1 = arith.constant 0 : index
    %c0_2 = arith.constant 0 : index
    %1 = vector.load %arg2[%c0_1, %c0_2] : memref<16x128xf32, #tpu.memory_space<vmem>>, vector<16x128xf32>
    %c0_3 = arith.constant 0 : index
    %c0_4 = arith.constant 0 : index
    %2 = vector.load %arg3[%c0_3, %c0_4] : memref<1x128xf32, #tpu.memory_space<vmem>>, vector<1x128xf32>
    %cst = arith.constant dense<0.000000e+00> : vector<2x128xf32>
    %3 = tpu.matmul %0, %1, %cst {dimension_numbers = #tpu.dot_dimension_numbers<[1], [0], [0], [1], [0, 0, 1, 1], [], []>} : vector<2x16xf32>, vector<16x128xf32>, vector<2x128xf32> -> vector<2x128xf32>
    %4 = vector.broadcast %2 : vector<1x128xf32> to vector<2x128xf32>
    %5 = arith.addf %3, %4 : vector<2x128xf32>
    %cst_5 = arith.constant 0.000000e+00 : f32
    %6 = vector.broadcast %cst_5 : f32 to vector<2x128xf32>
    %7 = arith.maximumf %5, %6 : vector<2x128xf32>
    %c0_6 = arith.constant 0 : index
    %c0_7 = arith.constant 0 : index
    %8 = vector.load %arg4[%c0_6, %c0_7] : memref<128x128xf32, #tpu.memory_space<vmem>>, vector<128x128xf32>
    %c0_8 = arith.constant 0 : index
    %c0_9 = arith.constant 0 : index
    %9 = vector.load %arg5[%c0_8, %c0_9] : memref<1x128xf32, #tpu.memory_space<vmem>>, vector<1x128xf32>
    %cst_10 = arith.constant dense<0.000000e+00> : vector<2x128xf32>
    %10 = tpu.matmul %7, %8, %cst_10 {dimension_numbers = #tpu.dot_dimension_numbers<[1], [0], [0], [1], [0, 0, 1, 1], [], []>} : vector<2x128xf32>, vector<128x128xf32>, vector<2x128xf32> -> vector<2x128xf32>
    %11 = vector.broadcast %9 : vector<1x128xf32> to vector<2x128xf32>
    %12 = arith.addf %10, %11 : vector<2x128xf32>
    %cst_11 = arith.constant 0.000000e+00 : f32
    %13 = vector.broadcast %cst_11 : f32 to vector<2x128xf32>
    %14 = arith.maximumf %12, %13 : vector<2x128xf32>
    %c0_12 = arith.constant 0 : index
    %c0_13 = arith.constant 0 : index
    %15 = vector.load %arg6[%c0_12, %c0_13] : memref<128x8xf32, #tpu.memory_space<vmem>>, vector<128x8xf32>
    %c0_14 = arith.constant 0 : index
    %c0_15 = arith.constant 0 : index
    %16 = vector.load %arg7[%c0_14, %c0_15] : memref<1x8xf32, #tpu.memory_space<vmem>>, vector<1x8xf32>
    %cst_16 = arith.constant dense<0.000000e+00> : vector<2x8xf32>
    %17 = tpu.matmul %14, %15, %cst_16 {dimension_numbers = #tpu.dot_dimension_numbers<[1], [0], [0], [1], [0, 0, 1, 1], [], []>} : vector<2x128xf32>, vector<128x8xf32>, vector<2x8xf32> -> vector<2x8xf32>
    %18 = vector.broadcast %16 : vector<1x8xf32> to vector<2x8xf32>
    %19 = arith.addf %17, %18 : vector<2x8xf32>
    %20 = math.tanh %19 : vector<2x8xf32>
    %c0_17 = arith.constant 0 : index
    %c0_18 = arith.constant 0 : index
    %21 = vector.load %arg8[%c0_17, %c0_18] : memref<2x8xf32, #tpu.memory_space<vmem>>, vector<2x8xf32>
    tpu.vector_store %arg8[%c0_17, %c0_18], %20 {strides = array<i32>} : memref<2x8xf32, #tpu.memory_space<vmem>>, vector<2x8xf32>,
    return
  }
  func.func @transform_0(%arg0: i32) -> (i32, i32) {
    %c0_i32 = arith.constant 0 : i32
    %c0_i32_0 = arith.constant 0 : i32
    return %arg0, %c0_i32 : i32, i32
  }
  func.func @transform_1(%arg0: i32) -> (i32, i32) {
    %c0_i32 = arith.constant 0 : i32
    %c0_i32_0 = arith.constant 0 : i32
    %c0_i32_1 = arith.constant 0 : i32
    return %c0_i32, %c0_i32_0 : i32, i32
  }
  func.func @transform_2(%arg0: i32) -> (i32, i32) {
    %c0_i32 = arith.constant 0 : i32
    %c0_i32_0 = arith.constant 0 : i32
    %c0_i32_1 = arith.constant 0 : i32
    return %c0_i32, %c0_i32_0 : i32, i32
  }
  func.func @transform_3(%arg0: i32) -> (i32, i32) {
    %c0_i32 = arith.constant 0 : i32
    %c0_i32_0 = arith.constant 0 : i32
    %c0_i32_1 = arith.constant 0 : i32
    return %c0_i32, %c0_i32_0 : i32, i32
  }
  func.func @transform_4(%arg0: i32) -> (i32, i32) {
    %c0_i32 = arith.constant 0 : i32
    %c0_i32_0 = arith.constant 0 : i32
    %c0_i32_1 = arith.constant 0 : i32
    return %c0_i32, %c0_i32_0 : i32, i32
  }
  func.func @transform_5(%arg0: i32) -> (i32, i32) {
    %c0_i32 = arith.constant 0 : i32
    %c0_i32_0 = arith.constant 0 : i32
    %c0_i32_1 = arith.constant 0 : i32
    return %c0_i32, %c0_i32_0 : i32, i32
  }
  func.func @transform_6(%arg0: i32) -> (i32, i32) {
    %c0_i32 = arith.constant 0 : i32
    %c0_i32_0 = arith.constant 0 : i32
    %c0_i32_1 = arith.constant 0 : i32
    return %c0_i32, %c0_i32_0 : i32, i32
  }
  func.func @transform_7(%arg0: i32) -> (i32, i32) {
    %c0_i32 = arith.constant 0 : i32
    %c0_i32_0 = arith.constant 0 : i32
    return %arg0, %c0_i32 : i32, i32
  }
}

</mosaic_0001>

<bundles_post_ra>
// kernel: tpu_custom_call.1
= control target key start
LH: loop header
LB: loop body
LE: loop exit
PB: predicated region body
PF: predicated region fallthrough
CT: control target
= control target key end

     0   :  { %12 = vsyncpa [#allocation3], 0  ;;  %s701_s0 = inlined_call_operand.vmem [shape: f32[2,16], index: 0, kind: input, shape index: {}]   ;;  %s702_s1 = inlined_call_operand.hbm [shape: f32[16,128], index: 1, kind: input, shape index: {}]   ;;  %s703_s2 = inlined_call_operand.vmem [shape: f32[1,128], index: 2, kind: input, shape index: {}]   ;;  %s704_s3 = inlined_call_operand.vmem [shape: f32[128,128], index: 3, kind: input, shape index: {}]   ;;  %s705_s4 = inlined_call_operand.vmem [shape: f32[1,128], index: 4, kind: input, shape index: {}]   ;;  %s706_s5 = inlined_call_operand.vmem [shape: f32[128,8], index: 5, kind: input, shape index: {}]   ;;  %s707_s6 = inlined_call_operand.vmem [shape: f32[1,8], index: 6, kind: input, shape index: {}]   ;;  %s708_s7 = inlined_call_operand.hbm [shape: f32[2,8], index: 7, kind: output, shape index: {}]  }
   0x1   :  { %13 = vsyncpa [#allocation4], 0  ;;  %s501_s24 = smov [#allocation2]  }
   0x2   :  { %s21_s25 = sshll.u32 %s501_s24, 4  ;;  %s22_s25 = int_to_ptr.vmem [resolvable:$true] %s21_s25 }
   0x3   :  { %s465_s26 = scalar_lea.vmem %s22_s25, 256  ;;  %p470_p1 = scmp.lt.s32.totalorder %s22_s25, %s22_s25 }
   0x4   :  { %p466_p0 = scmp.ne.s32.totalorder %s22_s25, %s465_s26  ;;  %p471_p2 = scmp.lt.s32.totalorder %s465_s26, %s465_s26 }
   0x6   :  { %p472_p3 = por %p471_p2, %p470_p1 }
   0x8   :  { %p473_p4 = pnand %p472_p3, %p466_p0 }
   0xa   :  { %476 = shalt.err (!%p473_p4)
}
   0xb   :  { %s502_s27 = smov 128   ;;  %s503_s28 = smov 8  }
   0xc   :  { %27 = dma.hbm_to_vmem [thread:$0]  %s702_s1, 256, %s22_s25, [#allocation3], %s502_s27, %s502_s27, %s503_s28  }
   0xd   :  { %497 = dma.done.wait [#allocation3], 256  }
   0xe   :  { %498 = vsyncadd [#allocation3], 4294967040  ;;  %v504_v0 = vmov 0.0   ;;  %vm505_vm0 = vmmov 0   ;;  %v43_v1 = vld [vmem:[#allocation2 + $0x8] sm:$0xff]  ;;  %v42_v2 = vld [vmem:[#allocation2] sm:$0xff] }
   0xf   :  { %372 = vmatprep.subr.mxu0 %v504_v0  ;;  %376 = vmatprep.mubr.msk.f32.mxu0 %vm505_vm0, %v504_v0  ;;  %v41_v3 = vld [vmem:[%s701_s0] sm:$0x3]  ;;  %vm51_vm1 = vcmask 130048   ;;  %v141_v4 = vld [vmem:[%s704_s3 + $0x78] sm:$0xff]  ;;  %v140_v5 = vld [vmem:[%s704_s3 + $0x70] sm:$0xff]  ;;  %s506_s25 = smov [#allocation5]  }
  0x10   :  { %379 = vmatprep.subr.mxu1 %v504_v0  ;;  %411 = vmatprep.mubr.msk.f32.mxu1 %vm505_vm0, %v504_v0  ;;  %v139_v6 = vld [vmem:[%s704_s3 + $0x68] sm:$0xff]  ;;  %v138_v7 = vld [vmem:[%s704_s3 + $0x60] sm:$0xff]  ;;  %v137_v8 = vld [vmem:[%s704_s3 + $0x58] sm:$0xff]  ;;  %vm314_vm2 = vcmask 58368  }
  0x11   :  { %373 = vmatpush3.msra.mxu0 %v43_v1  ;;  %380 = vmatpush3.msra.mxu1 %v141_v4  ;;  %v136_v9 = vld [vmem:[%s704_s3 + $0x50] sm:$0xff]  ;;  %v135_v10 = vld [vmem:[%s704_s3 + $0x48] sm:$0xff]  ;;  %v134_v11 = vld [vmem:[%s704_s3 + $0x40] sm:$0xff] }
  0x12   :  { %374 = vmatprep.subr.mxu0 %v504_v0  ;;  %381 = vmatprep.subr.mxu1 %v504_v0  ;;  %v133_v12 = vld [vmem:[%s704_s3 + $0x38] sm:$0xff]  ;;  %v132_v13 = vld [vmem:[%s704_s3 + $0x30] sm:$0xff]  ;;  %v131_v14 = vld [vmem:[%s704_s3 + $0x28] sm:$0xff] }
  0x13   :  { %375 = vmatpush3.msra.mxu0 %v42_v2  ;;  %382 = vmatpush3.msra.mxu1 %v140_v5  ;;  %v130_v15 = vld [vmem:[%s704_s3 + $0x20] sm:$0xff]  ;;  %v129_v16 = vld [vmem:[%s704_s3 + $0x18] sm:$0xff]  ;;  %v128_v17 = vld [vmem:[%s704_s3 + $0x10] sm:$0xff] }
  0x14   :  { %377 = vmatmul.mubr.msk.f32.vlgmr.msra.gmra.mxu0 %vm51_vm1, %v41_v3  ;;  %383 = vmatprep.subr.mxu1 %v504_v0  ;;  %v127_v18 = vld [vmem:[%s704_s3 + $0x8] sm:$0xff]  ;;  %v126_v19 = vld [vmem:[%s704_s3] sm:$0xff]  ;;  %v235_v20 = vld [vmem:[%s706_s5 + $0x78] sm:$0xff] }
  0x15   :  { %414 = vmatprep.subr.mxu0 %v504_v0  ;;  %384 = vmatpush3.msra.mxu1 %v139_v6  ;;  %v234_v21 = vld [vmem:[%s706_s5 + $0x70] sm:$0xff]  ;;  %v233_v22 = vld [vmem:[%s706_s5 + $0x68] sm:$0xff]  ;;  %v232_v23 = vld [vmem:[%s706_s5 + $0x60] sm:$0xff] }
  0x16   :  { %446 = vmatprep.mubr.msk.f32.mxu0 %vm505_vm0, %v504_v0  ;;  %385 = vmatprep.subr.mxu1 %v504_v0  ;;  %v231_v24 = vld [vmem:[%s706_s5 + $0x58] sm:$0xff]  ;;  %v230_v25 = vld [vmem:[%s706_s5 + $0x50] sm:$0xff]  ;;  %v229_v26 = vld [vmem:[%s706_s5 + $0x48] sm:$0xff] }
  0x17   :  { %386 = vmatpush3.msra.mxu1 %v138_v7  ;;  %415 = vmatpush3.msra.mxu0 %v235_v20  ;;  %v228_v27 = vld [vmem:[%s706_s5 + $0x40] sm:$0xff]  ;;  %v227_v28 = vld [vmem:[%s706_s5 + $0x38] sm:$0xff]  ;;  %v226_v29 = vld [vmem:[%s706_s5 + $0x30] sm:$0xff] }
  0x18   :  { %387 = vmatprep.subr.mxu1 %v504_v0  ;;  %416 = vmatprep.subr.mxu0 %v504_v0  ;;  %v225_v30 = vld [vmem:[%s706_s5 + $0x28] sm:$0xff]  ;;  %v224_v31 = vld [vmem:[%s706_s5 + $0x20] sm:$0xff]  ;;  %v223_v32 = vld [vmem:[%s706_s5 + $0x18] sm:$0xff] }
  0x19   :  { %388 = vmatpush3.msra.mxu1 %v137_v8  ;;  %417 = vmatpush3.msra.mxu0 %v234_v21  ;;  %v331_v33 = vld [vmem:[%s703_s2] ss:$0 sm:$0xff]  ;;  %v222_v38 = vld [vmem:[%s706_s5 + $0x10] sm:$0xff]  ;;  %v221_v39 = vld [vmem:[%s706_s5 + $0x8] sm:$0xff] }
  0x1a   :  { %389 = vmatprep.subr.mxu1 %v504_v0  ;;  %418 = vmatprep.subr.mxu0 %v504_v0  ;;  %v220_v40 = vld [vmem:[%s706_s5] sm:$0xff]  ;;  %s322_s5 = sshll.u32 %s506_s25, 4  ;;  %s323_s5 = int_to_ptr.vmem [resolvable:$true] %s322_s5 }
  0x1b   :  { %390 = vmatpush3.msra.mxu1 %v136_v9  ;;  %419 = vmatpush3.msra.mxu0 %v233_v22  ;;  %v333_v41 = vld [vmem:[%s705_s4] ss:$0 sm:$0xff]  ;;  %s477_s4 = scalar_lea.vmem %s323_s5, 32  ;;  %p482_p6 = scmp.lt.s32.totalorder %s323_s5, %s323_s5 }
  0x1c   :  { %391 = vmatprep.subr.mxu1 %v504_v0  ;;  %420 = vmatprep.subr.mxu0 %v504_v0  ;;  %v334_v46 = vld [vmem:[%s707_s6] ss:$0 sm:$0xff]  ;;  %p478_p5 = scmp.ne.s32.totalorder %s323_s5, %s477_s4  ;;  %p483_p7 = scmp.lt.s32.totalorder %s477_s4, %s477_s4 }
  0x1d   :  { %392 = vmatpush3.msra.mxu1 %v135_v10  ;;  %421 = vmatpush3.msra.mxu0 %v232_v23 }
  0x1e   :  { %393 = vmatprep.subr.mxu1 %v504_v0  ;;  %422 = vmatprep.subr.mxu0 %v504_v0  ;;  %p484_p8 = por %p483_p7, %p482_p6 }
  0x1f   :  { %394 = vmatpush3.msra.mxu1 %v134_v11  ;;  %423 = vmatpush3.msra.mxu0 %v231_v24 }
  0x20   :  { %395 = vmatprep.subr.mxu1 %v504_v0  ;;  %424 = vmatprep.subr.mxu0 %v504_v0  ;;  %p485_p9 = pnand %p484_p8, %p478_p5 }
  0x21   :  { %396 = vmatpush3.msra.mxu1 %v133_v12  ;;  %425 = vmatpush3.msra.mxu0 %v230_v25 }
  0x22   :  { %397 = vmatprep.subr.mxu1 %v504_v0  ;;  %426 = vmatprep.subr.mxu0 %v504_v0 }
  0x23   :  { %398 = vmatpush3.msra.mxu1 %v132_v13  ;;  %427 = vmatpush3.msra.mxu0 %v229_v26 }
  0x24   :  { %399 = vmatprep.subr.mxu1 %v504_v0  ;;  %428 = vmatprep.subr.mxu0 %v504_v0 }
  0x25   :  { %400 = vmatpush3.msra.mxu1 %v131_v14  ;;  %429 = vmatpush3.msra.mxu0 %v228_v27 }
  0x26   :  { %401 = vmatprep.subr.mxu1 %v504_v0  ;;  %430 = vmatprep.subr.mxu0 %v504_v0 }
  0x27   :  { %402 = vmatpush3.msra.mxu1 %v130_v15  ;;  %431 = vmatpush3.msra.mxu0 %v227_v28 }
  0x28   :  { %403 = vmatprep.subr.mxu1 %v504_v0  ;;  %432 = vmatprep.subr.mxu0 %v504_v0 }
  0x29   :  { %404 = vmatpush3.msra.mxu1 %v129_v16  ;;  %433 = vmatpush3.msra.mxu0 %v226_v29 }
  0x2a   :  { %405 = vmatprep.subr.mxu1 %v504_v0  ;;  %434 = vmatprep.subr.mxu0 %v504_v0 }
  0x2b   :  { %406 = vmatpush3.msra.mxu1 %v128_v17  ;;  %435 = vmatpush3.msra.mxu0 %v225_v30 }
  0x2c   :  { %407 = vmatprep.subr.mxu1 %v504_v0  ;;  %436 = vmatprep.subr.mxu0 %v504_v0 }
  0x2d   :  { %408 = vmatpush3.msra.mxu1 %v127_v18  ;;  %437 = vmatpush3.msra.mxu0 %v224_v31 }
  0x2e   :  { %409 = vmatprep.subr.mxu1 %v504_v0  ;;  %438 = vmatprep.subr.mxu0 %v504_v0 }
  0x2f   :  { %410 = vmatpush3.msra.mxu1 %v126_v19  ;;  %439 = vmatpush3.msra.mxu0 %v223_v32 }
  0x30   :  { %440 = vmatprep.subr.mxu0 %v504_v0 }
  0x31   :  { %441 = vmatpush3.msra.mxu0 %v222_v38 }
  0x32   :  { %442 = vmatprep.subr.mxu0 %v504_v0 }
  0x33   :  { %443 = vmatpush3.msra.mxu0 %v221_v39 }
  0x34   :  { %444 = vmatprep.subr.mxu0 %v504_v0 }
  0x35   :  { %445 = vmatpush3.msra.mxu0 %v220_v40 }
  0xd4   :  { %v121_v34 = vpop.f32.mrf.mxu0 }
  0xd5   :  { %v122_v35 = vadd.f32 %v331_v33, %v121_v34 }
  0xd6   :  { %v378_v36 = vpop.f32.mrf.mxu0 }
  0xd7   :  { %v125_v37 = vmax.f32 %v122_v35, 0.0 }
  0xd9   :  { %412 = vmatmul.mubr.f32.vlgmr.msra.gmra.mxu1 %v125_v37 }
 0x199   :  { %v215_v42 = vpop.f32.mrf.mxu1 }
 0x19a   :  { %v216_v43 = vadd.f32 %v333_v41, %v215_v42 }
 0x19b   :  { %v413_v44 = vpop.f32.mrf.mxu1 }
 0x19c   :  { %v219_v45 = vmax.f32 %v216_v43, 0.0 }
 0x19e   :  { %447 = vmatmul.mubr.f32.vlgmr.msra.gmra.mxu0 %v219_v45 }
 0x25e   :  { %v309_v47 = vpop.f32.mrf.mxu0 }
 0x25f   :  { %v310_v48 = vadd.f32 %v334_v46, %v309_v47 }
 0x260   :  { %v448_v49 = vpop.f32.mrf.mxu0 }
 0x261   :  { %455 = vtanh.f32 %v310_v48 }
 0x26e   :  { %v456_v50 = vpop.eup %455 }
 0x26f   :  { %315 = vst.msk [vmem:[#allocation5] sm:$0x3] %vm314_vm2, %v456_v50 }
 0x270   :  { %488 = shalt.err (!%p485_p9)
}
 0x271   :  { %325 = dma.vmem_to_hbm [thread:$0]  %s323_s5, 32, %s708_s7, [#allocation4]  }
 0x272   :  { %499 = dma.done.wait [#allocation4], 32  }
 0x273   :  { %500 = vsyncadd [#allocation4], 4294967264 }
 0x274   :  { %329 = vsyncpa [#allocation3], 1 }
 0x275   :  { %330 = vsyncpa [#allocation4], 1 }

</bundles_post_ra>
